<compile_context>
chip_gen: v7x
topology: tpu7x:2x2x1
jax: 0.10.0
libtpu: 0.0.40
codegen_flags: <defaults>
</compile_context>

<pallas_src>
import math
import functools

import jax
import jax.numpy as jnp
from jax import lax
from jax.experimental import pallas as pl
from jax.experimental.pallas import tpu as pltpu


def _mhsa_kernel(xq_ref, kp_ref, wq_ref, bq_ref, o_ref, *, d_k):
    # xq_ref: (1, TQ, D)        bf16 query rows for this q tile
    # kp_ref: (1, HB, S, d_k)   bf16 pre-projected keys for this head block
    # wq_ref: (D, HB*d_k)       bf16 Wq columns for this head block
    # bq_ref: (1, HB*d_k)       f32 bias slice for this head block
    # o_ref : (1, HB, TQ, S)    attention probabilities
    hb = kp_ref.shape[1]
    scale = 1.0 / math.sqrt(d_k)

    # Head-blocked Q projection: one full-width MXU matmul, f32 accumulation.
    qh = jnp.dot(xq_ref[0], wq_ref[...],
                 preferred_element_type=jnp.float32) + bq_ref[...]   # [TQ, HB*d_k]
    # Fold 1/sqrt(d_k) into q (TQ*HB*d_k mults instead of HB*TQ*S), then cast
    # back to the MXU operand dtype for the QK^T matmuls.
    qh = (qh * scale).astype(kp_ref.dtype)

    for h in range(hb):                                   # static unroll over heads
        q_h = qh[:, h * d_k:(h + 1) * d_k]                # [TQ, d_k]
        k_h = kp_ref[0, h]                                # [S,  d_k]
        # scores[i, j] = q_h[i, :] . k_h[j, :] -- contract last axes, no transpose.
        s = lax.dot_general(q_h, k_h, (((1,), (1,)), ((), ())),
                            preferred_element_type=jnp.float32)      # [TQ, S]
        # Numerically stable softmax over the key axis (f32 math).
        s = s - jnp.max(s, axis=-1, keepdims=True)
        p = jnp.exp(s)
        p = p / jnp.sum(p, axis=-1, keepdims=True)        # exact normalization
        o_ref[0, h] = p.astype(o_ref.dtype)


def _round_up(x, m):
    return ((x + m - 1) // m) * m


def _vmem_limit_bytes():
    """Physical-VMEM-aware scoped limit with headroom (v7x: 64 MiB -> 48 MiB)."""
    try:
        phys = pltpu.get_tpu_info().vmem_capacity_bytes
    except Exception:
        phys = 128 * 1024 * 1024
    return min(int(phys) * 3 // 4, 100 * 1024 * 1024)


def _pick_head_block(num_heads, d_k, target_cols=256):
    """Heads per grid step: HB*d_k ~ MXU width, subject to the (.,128)/full-dim
    layout constraint on the weight-column block (HB*d_k % 128 == 0 or HB == H)."""
    divisors = [hb for hb in range(1, num_heads + 1) if num_heads % hb == 0]
    ok = [hb for hb in divisors
          if (hb * d_k) % 128 == 0 and hb * d_k <= max(target_cols, d_k)]
    if ok:
        return max(ok)
    ok = [hb for hb in divisors if (hb * d_k) % 128 == 0]
    if ok:
        return min(ok)
    return num_heads            # full-dim block is always layout-legal


def multi_head_self_attention(query, key, wq, bq, wk, bk, *, num_heads,
                              q_tile=256, compute_dtype=jnp.bfloat16,
                              out_dtype=jnp.bfloat16):
    """query/key: [B, S, d_model]; x @ W + b convention. Returns [B, h, S, S]."""
    B, S, D = query.shape
    assert key.shape == (B, S, D)
    assert D % num_heads == 0
    d_k = D // num_heads

    # ---- K projection hoisted out of the kernel (one big, MXU-efficient matmul).
    kproj = jnp.dot(key.astype(compute_dtype), wk.astype(compute_dtype),
                    preferred_element_type=jnp.float32) + bk          # [B, S, D] f32
    kproj = kproj.reshape(B, S, num_heads, d_k).transpose(0, 2, 1, 3)
    kproj = kproj.astype(compute_dtype)                               # [B, H, S, d_k]

    xq = query.astype(compute_dtype)                                  # [B, S, D]
    wq_c = wq.astype(compute_dtype)                                   # [D, H*d_k]
    bq_c = bq.reshape(1, D).astype(jnp.float32)                       # [1, H*d_k]

    # ---- head blocking.
    HB = _pick_head_block(num_heads, d_k)
    n_hb = num_heads // HB

    # ---- q tiling with tail padding (no divisor-only fallback).
    vmem_limit = _vmem_limit_bytes()
    TQ = min(q_tile, _round_up(S, 8))
    TQ = max(8, (TQ // 8) * 8)
    out_itemsize = jnp.dtype(out_dtype).itemsize
    # Keep the double-buffered output block within a third of the VMEM budget.
    while TQ > 8 and 2 * HB * TQ * S * out_itemsize > vmem_limit // 3:
        TQ = max(8, _round_up(TQ // 2, 8))
    S_qpad = _round_up(S, TQ)
    n_q = S_qpad // TQ
    if S_qpad != S:
        xq = jnp.pad(xq, ((0, 0), (0, S_qpad - S), (0, 0)))

    kernel = functools.partial(_mhsa_kernel, d_k=d_k)

    attn = pl.pallas_call(
        kernel,
        out_shape=jax.ShapeDtypeStruct((B, num_heads, S_qpad, S), out_dtype),
        grid_spec=pltpu.PrefetchScalarGridSpec(
            num_scalar_prefetch=0,
            grid=(B, n_hb, n_q),
            in_specs=[
                pl.BlockSpec((1, TQ, D), lambda b, hb, q: (b, q, 0)),       # query rows
                pl.BlockSpec((1, HB, S, d_k), lambda b, hb, q: (b, hb, 0, 0)),  # K_proj
                pl.BlockSpec((D, HB * d_k), lambda b, hb, q: (0, hb)),      # Wq[head block]
                pl.BlockSpec((1, HB * d_k), lambda b, hb, q: (0, hb)),      # bq[head block]
            ],
            out_specs=pl.BlockSpec((1, HB, TQ, S),
                                   lambda b, hb, q: (b, hb, q, 0)),
        ),
        compiler_params=pltpu.CompilerParams(
            # No cross-step carry anywhere -> all axes independent.
            dimension_semantics=("parallel", "parallel", "parallel"),
            vmem_limit_bytes=vmem_limit,
        ),
    )(xq, kproj, wq_c, bq_c)

    if S_qpad != S:
        attn = attn[:, :, :S, :]
    return attn


def _reference(query, key, wq, bq, wk, bk, num_heads):
    B, S, D = query.shape
    d_k = D // num_heads
    q = query @ wq + bq
    k = key @ wk + bk
    q = q.reshape(B, S, num_heads, d_k).transpose(0, 2, 1, 3)
    k = k.reshape(B, S, num_heads, d_k).transpose(0, 2, 1, 3)
    scores = jnp.einsum("bhqd,bhkd->bhqk", q, k) / math.sqrt(d_k)
    return jax.nn.softmax(scores, axis=-1)


if __name__ == "__main__":
    # Small, deterministic example: B=2, S=8, d_model=32, h=4 (d_k=8)
    B, S, D, H = 2, 8, 32, 4

    key0 = jax.random.PRNGKey(0)
    k_q, k_k, k_wq, k_bq, k_wk, k_bk = jax.random.split(key0, 6)

    query = jax.random.normal(k_q, (B, S, D), dtype=jnp.float32)
    key_in = jax.random.normal(k_k, (B, S, D), dtype=jnp.float32)

    # nn.Linear(d_model, d_model)-shaped parameters, deterministic init
    # (uniform in +-1/sqrt(d_model), like the PyTorch default).
    bound = 1.0 / math.sqrt(D)
    wq = jax.random.uniform(k_wq, (D, D), jnp.float32, -bound, bound)
    bq = jax.random.uniform(k_bq, (D,), jnp.float32, -bound, bound)
    wk = jax.random.uniform(k_wk, (D, D), jnp.float32, -bound, bound)
    bk = jax.random.uniform(k_bk, (D,), jnp.float32, -bound, bound)

    attn = multi_head_self_attention(query, key_in, wq, bq, wk, bk, num_heads=H)
    attn = jax.block_until_ready(attn)

    ref = _reference(query, key_in, wq, bq, wk, bk, H)
    assert attn.shape == (B, H, S, S)
    # bf16 MXU operands + bf16 output -> mixed-precision tolerance.
    attn_f32 = attn.astype(jnp.float32)
    assert jnp.allclose(attn_f32, ref, atol=3e-2, rtol=3e-2)
    # rows of attention probabilities must sum to ~1 (exact divide, bf16 store)
    assert jnp.allclose(jnp.sum(attn_f32, axis=-1), 1.0, atol=2e-2)

    print("KERNEL_OK")
</pallas_src>

<mosaic_0001>
module attributes {stable_mosaic.version = 11 : i64} {
  func.func @_mhsa_kernel(%arg0: i32, %arg1: i32, %arg2: i32, %arg3: memref<1x8x32xbf16, #tpu.memory_space<vmem>>, %arg4: memref<1x4x8x8xbf16, #tpu.memory_space<vmem>>, %arg5: memref<32x32xbf16, #tpu.memory_space<vmem>>, %arg6: memref<1x32xf32, #tpu.memory_space<vmem>>, %arg7: memref<1x4x8x8xbf16, #tpu.memory_space<vmem>>) attributes {dimension_semantics = [#tpu.dimension_semantics<parallel>, #tpu.dimension_semantics<parallel>, #tpu.dimension_semantics<parallel>], iteration_bounds = array<i64: 2, 1, 1>, scalar_prefetch = 0 : i64, scratch_operands = 0 : i64, tpu.core_type = #tpu.core_type<tc>, window_params = [{transform_indices = @transform_0, window_bounds = array<i64: 1, 8, 32>}, {transform_indices = @transform_1, window_bounds = array<i64: 1, 4, 8, 8>}, {transform_indices = @transform_2, window_bounds = array<i64: 32, 32>}, {transform_indices = @transform_3, window_bounds = array<i64: 1, 32>}, {transform_indices = @transform_4, window_bounds = array<i64: 1, 4, 8, 8>}]} {
    %c0 = arith.constant 0 : index
    %c0_0 = arith.constant 0 : index
    %c0_1 = arith.constant 0 : index
    %0 = vector.load %arg3[%c0, %c0_0, %c0_1] : memref<1x8x32xbf16, #tpu.memory_space<vmem>>, vector<1x8x32xbf16>
    %1 = vector.shape_cast %0 : vector<1x8x32xbf16> to vector<8x32xbf16>
    %c0_2 = arith.constant 0 : index
    %c0_3 = arith.constant 0 : index
    %2 = vector.load %arg5[%c0_2, %c0_3] : memref<32x32xbf16, #tpu.memory_space<vmem>>, vector<32x32xbf16>
    %cst = arith.constant dense<0.000000e+00> : vector<8x32xf32>
    %3 = tpu.matmul %1, %2, %cst {dimension_numbers = #tpu.dot_dimension_numbers<[1], [0], [0], [1], [0, 0, 1, 1], [], []>} : vector<8x32xbf16>, vector<32x32xbf16>, vector<8x32xf32> -> vector<8x32xf32>
    %c0_4 = arith.constant 0 : index
    %c0_5 = arith.constant 0 : index
    %4 = vector.load %arg6[%c0_4, %c0_5] : memref<1x32xf32, #tpu.memory_space<vmem>>, vector<1x32xf32>
    %5 = vector.broadcast %4 : vector<1x32xf32> to vector<8x32xf32>
    %6 = arith.addf %3, %5 : vector<8x32xf32>
    %cst_6 = arith.constant 0.353553385 : f32
    %7 = vector.broadcast %cst_6 : f32 to vector<8x32xf32>
    %8 = arith.mulf %6, %7 : vector<8x32xf32>
    %9 = arith.truncf %8 : vector<8x32xf32> to vector<8x32xbf16>
    %10 = vector.extract_strided_slice %9 {offsets = [0, 0], sizes = [8, 8], strides = [1, 1]} : vector<8x32xbf16> to vector<8x8xbf16>
    %c0_7 = arith.constant 0 : index
    %c0_8 = arith.constant 0 : index
    %c0_9 = arith.constant 0 : index
    %c0_10 = arith.constant 0 : index
    %11 = vector.load %arg4[%c0_7, %c0_8, %c0_9, %c0_10] : memref<1x4x8x8xbf16, #tpu.memory_space<vmem>>, vector<1x1x8x8xbf16>
    %12 = vector.shape_cast %11 : vector<1x1x8x8xbf16> to vector<8x8xbf16>
    %cst_11 = arith.constant dense<0.000000e+00> : vector<8x8xf32>
    %13 = tpu.matmul %10, %12, %cst_11 {dimension_numbers = #tpu.dot_dimension_numbers<[1], [1], [0], [0], [0, 0, 1, 0], [], []>} : vector<8x8xbf16>, vector<8x8xbf16>, vector<8x8xf32> -> vector<8x8xf32>
    %cst_12 = arith.constant dense<0xFF800000> : vector<8xf32>
    %14 = vector.multi_reduction <maximumf>, %13, %cst_12 [1] : vector<8x8xf32> to vector<8xf32>
    %15 = vector.shape_cast %14 : vector<8xf32> to vector<8x1xf32>
    %16 = vector.broadcast %15 : vector<8x1xf32> to vector<8x8xf32>
    %17 = arith.subf %13, %16 : vector<8x8xf32>
    %18 = math.exp %17 : vector<8x8xf32>
    %cst_13 = arith.constant dense<0.000000e+00> : vector<8xf32>
    %19 = vector.multi_reduction <add>, %18, %cst_13 [1] : vector<8x8xf32> to vector<8xf32>
    %20 = vector.shape_cast %19 : vector<8xf32> to vector<8x1xf32>
    %21 = vector.broadcast %20 : vector<8x1xf32> to vector<8x8xf32>
    %22 = arith.divf %18, %21 : vector<8x8xf32>
    %23 = arith.truncf %22 : vector<8x8xf32> to vector<8x8xbf16>
    %c0_14 = arith.constant 0 : index
    %c0_15 = arith.constant 0 : index
    %c0_16 = arith.constant 0 : index
    %c0_17 = arith.constant 0 : index
    %24 = vector.load %arg7[%c0_14, %c0_15, %c0_16, %c0_17] : memref<1x4x8x8xbf16, #tpu.memory_space<vmem>>, vector<1x1x8x8xbf16>
    %25 = vector.shape_cast %24 : vector<1x1x8x8xbf16> to vector<8x8xbf16>
    %26 = vector.shape_cast %23 : vector<8x8xbf16> to vector<1x1x8x8xbf16>
    tpu.vector_store %arg7[%c0_14, %c0_15, %c0_16, %c0_17], %26 {strides = array<i32>} : memref<1x4x8x8xbf16, #tpu.memory_space<vmem>>, vector<1x1x8x8xbf16>,
    %27 = vector.extract_strided_slice %9 {offsets = [0, 8], sizes = [8, 8], strides = [1, 1]} : vector<8x32xbf16> to vector<8x8xbf16>
    %c0_18 = arith.constant 0 : index
    %c1 = arith.constant 1 : index
    %c0_19 = arith.constant 0 : index
    %c0_20 = arith.constant 0 : index
    %28 = vector.load %arg4[%c0_18, %c1, %c0_19, %c0_20] : memref<1x4x8x8xbf16, #tpu.memory_space<vmem>>, vector<1x1x8x8xbf16>
    %29 = vector.shape_cast %28 : vector<1x1x8x8xbf16> to vector<8x8xbf16>
    %cst_21 = arith.constant dense<0.000000e+00> : vector<8x8xf32>
    %30 = tpu.matmul %27, %29, %cst_21 {dimension_numbers = #tpu.dot_dimension_numbers<[1], [1], [0], [0], [0, 0, 1, 0], [], []>} : vector<8x8xbf16>, vector<8x8xbf16>, vector<8x8xf32> -> vector<8x8xf32>
    %cst_22 = arith.constant dense<0xFF800000> : vector<8xf32>
    %31 = vector.multi_reduction <maximumf>, %30, %cst_22 [1] : vector<8x8xf32> to vector<8xf32>
    %32 = vector.shape_cast %31 : vector<8xf32> to vector<8x1xf32>
    %33 = vector.broadcast %32 : vector<8x1xf32> to vector<8x8xf32>
    %34 = arith.subf %30, %33 : vector<8x8xf32>
    %35 = math.exp %34 : vector<8x8xf32>
    %cst_23 = arith.constant dense<0.000000e+00> : vector<8xf32>
    %36 = vector.multi_reduction <add>, %35, %cst_23 [1] : vector<8x8xf32> to vector<8xf32>
    %37 = vector.shape_cast %36 : vector<8xf32> to vector<8x1xf32>
    %38 = vector.broadcast %37 : vector<8x1xf32> to vector<8x8xf32>
    %39 = arith.divf %35, %38 : vector<8x8xf32>
    %40 = arith.truncf %39 : vector<8x8xf32> to vector<8x8xbf16>
    %c0_24 = arith.constant 0 : index
    %c1_25 = arith.constant 1 : index
    %c0_26 = arith.constant 0 : index
    %c0_27 = arith.constant 0 : index
    %41 = vector.load %arg7[%c0_24, %c1_25, %c0_26, %c0_27] : memref<1x4x8x8xbf16, #tpu.memory_space<vmem>>, vector<1x1x8x8xbf16>
    %42 = vector.shape_cast %41 : vector<1x1x8x8xbf16> to vector<8x8xbf16>
    %43 = vector.shape_cast %40 : vector<8x8xbf16> to vector<1x1x8x8xbf16>
    tpu.vector_store %arg7[%c0_24, %c1_25, %c0_26, %c0_27], %43 {strides = array<i32>} : memref<1x4x8x8xbf16, #tpu.memory_space<vmem>>, vector<1x1x8x8xbf16>,
    %44 = vector.extract_strided_slice %9 {offsets = [0, 16], sizes = [8, 8], strides = [1, 1]} : vector<8x32xbf16> to vector<8x8xbf16>
    %c0_28 = arith.constant 0 : index
    %c2 = arith.constant 2 : index
    %c0_29 = arith.constant 0 : index
    %c0_30 = arith.constant 0 : index
    %45 = vector.load %arg4[%c0_28, %c2, %c0_29, %c0_30] : memref<1x4x8x8xbf16, #tpu.memory_space<vmem>>, vector<1x1x8x8xbf16>
    %46 = vector.shape_cast %45 : vector<1x1x8x8xbf16> to vector<8x8xbf16>
    %cst_31 = arith.constant dense<0.000000e+00> : vector<8x8xf32>
    %47 = tpu.matmul %44, %46, %cst_31 {dimension_numbers = #tpu.dot_dimension_numbers<[1], [1], [0], [0], [0, 0, 1, 0], [], []>} : vector<8x8xbf16>, vector<8x8xbf16>, vector<8x8xf32> -> vector<8x8xf32>
    %cst_32 = arith.constant dense<0xFF800000> : vector<8xf32>
    %48 = vector.multi_reduction <maximumf>, %47, %cst_32 [1] : vector<8x8xf32> to vector<8xf32>
    %49 = vector.shape_cast %48 : vector<8xf32> to vector<8x1xf32>
    %50 = vector.broadcast %49 : vector<8x1xf32> to vector<8x8xf32>
    %51 = arith.subf %47, %50 : vector<8x8xf32>
    %52 = math.exp %51 : vector<8x8xf32>
    %cst_33 = arith.constant dense<0.000000e+00> : vector<8xf32>
    %53 = vector.multi_reduction <add>, %52, %cst_33 [1] : vector<8x8xf32> to vector<8xf32>
    %54 = vector.shape_cast %53 : vector<8xf32> to vector<8x1xf32>
    %55 = vector.broadcast %54 : vector<8x1xf32> to vector<8x8xf32>
    %56 = arith.divf %52, %55 : vector<8x8xf32>
    %57 = arith.truncf %56 : vector<8x8xf32> to vector<8x8xbf16>
    %c0_34 = arith.constant 0 : index
    %c2_35 = arith.constant 2 : index
    %c0_36 = arith.constant 0 : index
    %c0_37 = arith.constant 0 : index
    %58 = vector.load %arg7[%c0_34, %c2_35, %c0_36, %c0_37] : memref<1x4x8x8xbf16, #tpu.memory_space<vmem>>, vector<1x1x8x8xbf16>
    %59 = vector.shape_cast %58 : vector<1x1x8x8xbf16> to vector<8x8xbf16>
    %60 = vector.shape_cast %57 : vector<8x8xbf16> to vector<1x1x8x8xbf16>
    tpu.vector_store %arg7[%c0_34, %c2_35, %c0_36, %c0_37], %60 {strides = array<i32>} : memref<1x4x8x8xbf16, #tpu.memory_space<vmem>>, vector<1x1x8x8xbf16>,
    %61 = vector.extract_strided_slice %9 {offsets = [0, 24], sizes = [8, 8], strides = [1, 1]} : vector<8x32xbf16> to vector<8x8xbf16>
    %c0_38 = arith.constant 0 : index
    %c3 = arith.constant 3 : index
    %c0_39 = arith.constant 0 : index
    %c0_40 = arith.constant 0 : index
    %62 = vector.load %arg4[%c0_38, %c3, %c0_39, %c0_40] : memref<1x4x8x8xbf16, #tpu.memory_space<vmem>>, vector<1x1x8x8xbf16>
    %63 = vector.shape_cast %62 : vector<1x1x8x8xbf16> to vector<8x8xbf16>
    %cst_41 = arith.constant dense<0.000000e+00> : vector<8x8xf32>
    %64 = tpu.matmul %61, %63, %cst_41 {dimension_numbers = #tpu.dot_dimension_numbers<[1], [1], [0], [0], [0, 0, 1, 0], [], []>} : vector<8x8xbf16>, vector<8x8xbf16>, vector<8x8xf32> -> vector<8x8xf32>
    %cst_42 = arith.constant dense<0xFF800000> : vector<8xf32>
    %65 = vector.multi_reduction <maximumf>, %64, %cst_42 [1] : vector<8x8xf32> to vector<8xf32>
    %66 = vector.shape_cast %65 : vector<8xf32> to vector<8x1xf32>
    %67 = vector.broadcast %66 : vector<8x1xf32> to vector<8x8xf32>
    %68 = arith.subf %64, %67 : vector<8x8xf32>
    %69 = math.exp %68 : vector<8x8xf32>
    %cst_43 = arith.constant dense<0.000000e+00> : vector<8xf32>
    %70 = vector.multi_reduction <add>, %69, %cst_43 [1] : vector<8x8xf32> to vector<8xf32>
    %71 = vector.shape_cast %70 : vector<8xf32> to vector<8x1xf32>
    %72 = vector.broadcast %71 : vector<8x1xf32> to vector<8x8xf32>
    %73 = arith.divf %69, %72 : vector<8x8xf32>
    %74 = arith.truncf %73 : vector<8x8xf32> to vector<8x8xbf16>
    %c0_44 = arith.constant 0 : index
    %c3_45 = arith.constant 3 : index
    %c0_46 = arith.constant 0 : index
    %c0_47 = arith.constant 0 : index
    %75 = vector.load %arg7[%c0_44, %c3_45, %c0_46, %c0_47] : memref<1x4x8x8xbf16, #tpu.memory_space<vmem>>, vector<1x1x8x8xbf16>
    %76 = vector.shape_cast %75 : vector<1x1x8x8xbf16> to vector<8x8xbf16>
    %77 = vector.shape_cast %74 : vector<8x8xbf16> to vector<1x1x8x8xbf16>
    tpu.vector_store %arg7[%c0_44, %c3_45, %c0_46, %c0_47], %77 {strides = array<i32>} : memref<1x4x8x8xbf16, #tpu.memory_space<vmem>>, vector<1x1x8x8xbf16>,
    return
  }
  func.func @transform_0(%arg0: i32, %arg1: i32, %arg2: i32) -> (i32, i32, i32) {
    %c0_i32 = arith.constant 0 : i32
    %c0_i32_0 = arith.constant 0 : i32
    return %arg0, %arg2, %c0_i32 : i32, i32, i32
  }
  func.func @transform_1(%arg0: i32, %arg1: i32, %arg2: i32) -> (i32, i32, i32, i32) {
    %c0_i32 = arith.constant 0 : i32
    %c0_i32_0 = arith.constant 0 : i32
    %c0_i32_1 = arith.constant 0 : i32
    return %arg0, %arg1, %c0_i32, %c0_i32_0 : i32, i32, i32, i32
  }
  func.func @transform_2(%arg0: i32, %arg1: i32, %arg2: i32) -> (i32, i32) {
    %c0_i32 = arith.constant 0 : i32
    %c0_i32_0 = arith.constant 0 : i32
    return %c0_i32, %arg1 : i32, i32
  }
  func.func @transform_3(%arg0: i32, %arg1: i32, %arg2: i32) -> (i32, i32) {
    %c0_i32 = arith.constant 0 : i32
    %c0_i32_0 = arith.constant 0 : i32
    return %c0_i32, %arg1 : i32, i32
  }
  func.func @transform_4(%arg0: i32, %arg1: i32, %arg2: i32) -> (i32, i32, i32, i32) {
    %c0_i32 = arith.constant 0 : i32
    %c0_i32_0 = arith.constant 0 : i32
    return %arg0, %arg1, %arg2, %c0_i32 : i32, i32, i32, i32
  }
}

</mosaic_0001>

<bundles_post_ra>
// kernel: tpu_custom_call.1
= control target key start
LH: loop header
LB: loop body
LE: loop exit
PB: predicated region body
PF: predicated region fallthrough
CT: control target
= control target key end

     0   :  { %s1596_s0 = inlined_call_operand.hbm [shape: bf16[2,8,32], index: 0, kind: input, shape index: {}]   ;;  %s1597_s1 = inlined_call_operand.hbm [shape: bf16[2,4,8,8], index: 1, kind: input, shape index: {}]   ;;  %s1598_s2 = inlined_call_operand.hbm [shape: bf16[32,32], index: 2, kind: input, shape index: {}]   ;;  %s1599_s3 = inlined_call_operand.hbm [shape: f32[1,32], index: 3, kind: input, shape index: {}]   ;;  %s1600_s4 = inlined_call_operand.hbm [shape: bf16[2,4,8,8], index: 4, kind: output, shape index: {}]  }
   0x1   :  { %1606 = sst [smem:[#allocation16_spill]] %s1596_s0 }
   0x2   :  { %1607 = sst [smem:[#allocation17_spill]] %s1598_s2 }
   0x3   :  { %9 = vsyncpa [#allocation3], 0 }
   0x4   :  { %11 = vsyncpa [#allocation3 + $0x1], 0 }
   0x5   :  { %12 = vsyncpa [#allocation6], 0 }
   0x6   :  { %14 = vsyncpa [#allocation6 + $0x1], 0 }
   0x7   :  { %15 = vsyncpa [#allocation9], 0 }
   0x8   :  { %16 = vsyncpa [#allocation4], 0 }
   0x9   :  { %18 = vsyncpa [#allocation4 + $0x1], 0  ;;  %s1254_s15 = smov 0   ;;  %s1256_s16 = smov 0  }
   0xa   :  { %s1258_s17 = smov 0   ;;  %s1260_s18 = smov 0  }
   0xb   :  { %s1262_s19 = smov 0   ;;  %s1264_s20 = smov 0  }
   0xc LB: > { %s1285_s21 = sadd.s32 4294967295, %s1213_s20   ;;  %s808_s22 = sadd.s32 4294967294, %s1213_s20   ;;  %s1213_s20 = sphi %s1264_s20, %s24_s20   ;;  %s1209_s19 = sphi %s1262_s19, %s1631_s19   ;;  %s1205_s18 = sphi %s1260_s18, %s1630_s18   ;;  %s1201_s17 = sphi %s1258_s17, %s1629_s17   ;;  %s1197_s16 = sphi %s1256_s16, %s1628_s16   ;;  %s1193_s15 = sphi %s1254_s15, %s1627_s15  }
   0xd   : > { %p65_p0 = scmp.ne.s32.totalorder %s1197_s16, %s1193_s15  ;;  %p1601_p1 = scmp.eq.s32.totalorder %s1285_s21, 0 }
   0xe   : > { %p179_p3 = scmp.eq.s32.totalorder %s808_s22, 1  ;;  %p809_p5 = scmp.ge.s32.totalorder %s1213_s20, 1 }
   0xf   : > { %p1294_p4 = por %p1601_p1, %p65_p0  ;;  %p186_p7 = scmp.lt.s32.totalorder %s1213_s20, 3 }
  0x10   : > { %p1299_p6 = por %p179_p3, %p65_p0  ;;  %s1215_s26 = smov [#allocation7]  }
  0x11   : > { %s1608_s23 = scalar_select %p1294_p4, 1, 0 }
  0x12   : > { %s1609_s24 = scalar_select %p1299_p6, 1, 0 }
  0x13   : > { %p1304_p8 = pnand %p809_p5, %p186_p7  ;;  %s200_s27 = sshll.u32 %s1215_s26, 4  ;;  %s1308_s27 = int_to_ptr.vmem [resolvable:$true] %s200_s27 }
  0x14   : > { %s1216_s29 = smov [#allocation8]   ;;  %s1612_s2 = sld [smem:[#allocation17_spill]] }
  0x15   : > { %p902_p9 = pneg %p1304_p8  ;;  %s216_s30 = sshll.u32 %s1216_s29, 4  ;;  %s1319_s30 = int_to_ptr.vmem [resolvable:$true] %s216_s30 }
  0x17   : > { %p1315_p11 = pnand %p902_p9, %p1601_p1 }
  0x19   : > { %p1005_p13 = pneg %p1315_p11 }
  0x1a   : > { %s1003_s7 = scalar_lea.hbm %s1612_s2, 256 }
  0x1b   : > { %p1004_p12 = scmp.ne.s32.totalorder %s1612_s2, %s1003_s7  ;;  %p1010_p5 = scmp.lt.u32.totalorder %s1003_s7, %s1612_s2 }
  0x1d   : > { %p1006_p0 = pnand %p1005_p13, %p1004_p12 }
  0x1f   : > { %p1007_p3 = pneg %p1006_p0 }
  0x21   : > { %p1012_p7 = pnand %p1010_p5, %p1007_p3 }
  0x23   : > { %1015 = shalt.err (!%p1012_p7)
}
  0x24   : > { %s1016_s12 = scalar_lea.vmem %s1308_s27, 256  ;;  %p1024_p2 = scmp.lt.s32.totalorder %s1308_s27, %s1308_s27 }
  0x25   : > { %p1017_p9 = scmp.ne.s32.totalorder %s1308_s27, %s1016_s12  ;;  %p1025_p12 = scmp.lt.s32.totalorder %s1016_s12, %s1016_s12 }
  0x27   : > { %p1019_p10 = pnand %p1017_p9, %p1005_p13  ;;  %p1026_p0 = por %p1025_p12, %p1024_p2 }
  0x29   : > { %p1020_p1 = pneg %p1019_p10 }
  0x2b   : > { %p1027_p6 = pnand %p1026_p0, %p1020_p1 }
  0x2d   : > { %1030 = shalt.err (!%p1027_p6)
}
  0x2e   : > { %s1602_s13 = smov 64   ;;  %s1603_s14 = smov 4  }
  0x2f   : > { %905 = dma.hbm_to_vmem [thread:$0]  (!%p1315_p11), %s1612_s2, 256, %s1308_s27, [#allocation6], %s1602_s13, %s1602_s13, %s1603_s14  }
  0x30   : > { %s1031_s6 = scalar_lea.hbm %s1599_s3, 16 }
  0x31   : > { %p1032_p1 = scmp.ne.s32.totalorder %s1599_s3, %s1031_s6  ;;  %p1038_p10 = scmp.lt.u32.totalorder %s1031_s6, %s1599_s3 }
  0x33   : > { %p1034_p2 = pnand %p1032_p1, %p1005_p13 }
  0x35   : > { %p1035_p6 = pneg %p1034_p2 }
  0x37   : > { %p1040_p3 = pnand %p1038_p10, %p1035_p6 }
  0x39   : > { %1043 = shalt.err (!%p1040_p3)
}
  0x3a   : > { %s1044_s27 = scalar_lea.vmem %s1319_s30, 16  ;;  %s1051_s11 = scalar_lea.vmem %s1319_s30, 32 }
  0x3b   : > { %p1045_p5 = scmp.ne.s32.totalorder %s1319_s30, %s1044_s27  ;;  %p1052_p12 = scmp.lt.s32.totalorder %s1319_s30, %s1319_s30 }
  0x3c   : > { %p1053_p0 = scmp.lt.s32.totalorder %s1051_s11, %s1044_s27 }
  0x3d   : > { %p1047_p7 = pnand %p1045_p5, %p1005_p13 }
  0x3e   : > { %p1054_p1 = por %p1053_p0, %p1052_p12 }
  0x3f   : > { %p1048_p9 = pneg %p1047_p7 }
  0x41   : > { %p1055_p2 = pnand %p1054_p1, %p1048_p9 }
  0x43   : > { %1058 = shalt.err (!%p1055_p2)
}
  0x44   : > { %908 = dma.hbm_to_vmem [thread:$0]  (!%p1315_p11), %s1599_s3, 16, %s1319_s30, [#allocation9]  }
  0x45   : > { %s43_s26 = sadd.s32 1, %s1209_s19  ;;  %s52_s29 = sadd.s32 1, %s1201_s17 }
  0x46   : > { %p45_p13 = scmp.ge.s32.totalorder %s43_s26, 2  ;;  %p59_p6 = scmp.ne.s32.totalorder %s1201_s17, %s1197_s16 }
  0x47   : > { %p60_p10 = scmp.eq.s32.totalorder %s1213_s20, 0  ;;  %p922_p3 = scmp.lt.s32.totalorder %s1213_s20, 2 }
  0x48   : > { %s1633_s26 = smov (%p45_p13, %s43_s26), 0  ;;  %p1613_p7 = scmp.eq.s32.totalorder %s1285_s21, 1 }
  0x49   : > { %p61_p5 = por %p60_p10, %p59_p6  ;;  %s47_s5 = ssub.s32 %s1209_s19, %s1633_s26 }
  0x4a   : > { %p1387_p9 = por %p1613_p7, %p59_p6  ;;  %s1394_s6 = sand.u32 1, %s1201_s17  }
  0x4b   : > { %p50_p11 = scmp.eq.s32.totalorder %s47_s5, 0  ;;  %s813_s30 = sshll.u32 %s1394_s6, 2 }
  0x4c   : > { %s1614_s28 = scalar_select %p1387_p9, 1, 0 }
  0x4d   : > { %s814_s7 = sshll.u32 %s1209_s19, 6  ;;  %s1615_s0 = sld [smem:[#allocation16_spill]] }
  0x4e   : > { %s1399_s8 = scalar_select %p50_p11, %s1201_s17, %s52_s29  }
  0x4f   : > { %s231_s11 = scalar_lea.vmem [#allocation2], %s813_s30  ;;  %p1408_p12 = pnand %p922_p3, %p61_p5 }
  0x50   : > { %s239_s12 = sshll.u32 %s231_s11, 4  ;;  %s815_s29 = sshll.u32 %s1394_s6, 4  ;;  %s1412_s12 = int_to_ptr.vmem [resolvable:$true] %s239_s12 }
  0x51   : > { %s228_s5 = scalar_lea.sflag [#allocation3], %s1394_s6  ;;  %p1061_p1 = pneg %p1408_p12 }
  0x53   : > { %s1404_s27 = scalar_lea.hbm %s1615_s0, %s814_s7  ;;  %s1064_s10 = scalar_lea.hbm %s1615_s0, 128 }
  0x54   : > { %s1059_s9 = scalar_lea.hbm %s1404_s27, 64  ;;  %p1065_p6 = scmp.lt.u32.totalorder %s1404_s27, %s1615_s0 }
  0x55   : > { %p1060_p0 = scmp.ne.s32.totalorder %s1404_s27, %s1059_s9  ;;  %p1066_p10 = scmp.lt.u32.totalorder %s1064_s10, %s1059_s9 }
  0x56   : > { %p1068_p5 = scmp.lt.u32.totalorder %s1059_s9, %s1404_s27 }
  0x57   : > { %p1062_p2 = pnand %p1061_p1, %p1060_p0  ;;  %p1067_p3 = por %p1066_p10, %p1065_p6 }
  0x59   : > { %p1063_p13 = pneg %p1062_p2  ;;  %p1069_p7 = por %p1068_p5, %p1067_p3 }
  0x5b   : > { %p1070_p11 = pnand %p1069_p7, %p1063_p13 }
  0x5d   : > { %1073 = shalt.err (!%p1070_p11)
}
  0x5e   : > { %s1074_s14 = scalar_lea.vmem %s1412_s12, 64  ;;  %s1219_s30 = smov [#allocation2]  }
  0x5f   : > { %p1075_p0 = scmp.ne.s32.totalorder %s1412_s12, %s1074_s14  ;;  %s1079_s7 = sshll.u32 %s1219_s30, 4  ;;  %s1080_s7 = int_to_ptr.vmem [resolvable:$false] %s1079_s7 }
  0x60   : > { %s1081_s13 = scalar_lea.vmem %s1080_s7, 128  ;;  %p1082_p4 = scmp.lt.s32.totalorder %s1412_s12, %s1080_s7 }
  0x61   : > { %p1077_p2 = pnand %p1075_p0, %p1061_p1  ;;  %p1083_p6 = scmp.lt.s32.totalorder %s1081_s13, %s1074_s14 }
  0x63   : > { %p1078_p9 = pneg %p1077_p2  ;;  %p1084_p10 = por %p1083_p6, %p1082_p4 }
  0x65   : > { %p1085_p3 = pnand %p1084_p10, %p1078_p9 }
  0x67   : > { %1088 = shalt.err (!%p1085_p3)
}
  0x68   : > { %912 = dma.hbm_to_vmem [thread:$0]  (!%p1408_p12), %s1404_s27, 64, %s1412_s12, %s228_s5  }
  0x69   : > { %s843_s9 = sshll.u32 %s1209_s19, 8  ;;  %s250_s10 = scalar_lea.vmem [#allocation5], %s815_s29 }
  0x6a   : > { %s259_s11 = sshll.u32 %s250_s10, 4  ;;  %s246_s30 = sand.u32 1, %s1213_s20   ;;  %s1444_s11 = int_to_ptr.vmem [resolvable:$true] %s259_s11 }
  0x6b   : > { %s1450_s13 = scalar_lea.hbm %s1597_s1, %s843_s9  ;;  %s1452_s0 = scalar_lea.sflag [#allocation6], %s246_s30 }
  0x6c   : > { %s1089_s2 = scalar_lea.hbm %s1450_s13, 256  ;;  %s1094_s12 = scalar_lea.hbm %s1597_s1, 512 }
  0x6d   : > { %p1090_p4 = scmp.ne.s32.totalorder %s1450_s13, %s1089_s2  ;;  %p1095_p5 = scmp.lt.u32.totalorder %s1450_s13, %s1597_s1 }
  0x6e   : > { %p1096_p7 = scmp.lt.u32.totalorder %s1094_s12, %s1089_s2  ;;  %p1098_p0 = scmp.lt.u32.totalorder %s1089_s2, %s1450_s13 }
  0x6f   : > { %p1092_p9 = pnand %p1090_p4, %p1061_p1 }
  0x70   : > { %p1097_p11 = por %p1096_p7, %p1095_p5 }
  0x71   : > { %p1093_p13 = pneg %p1092_p9 }
  0x72   : > { %p1099_p2 = por %p1098_p0, %p1097_p11 }
  0x74   : > { %p1100_p6 = pnand %p1099_p2, %p1093_p13 }
  0x76   : > { %1103 = shalt.err (!%p1100_p6)
}
  0x77   : > { %s1104_s9 = scalar_lea.vmem %s1444_s11, 256  ;;  %s1220_s10 = smov [#allocation5]  }
  0x78   : > { %p1105_p10 = scmp.ne.s32.totalorder %s1444_s11, %s1104_s9  ;;  %s1109_s30 = sshll.u32 %s1220_s10, 4  ;;  %s1110_s30 = int_to_ptr.vmem [resolvable:$false] %s1109_s30 }
  0x79   : > { %s1111_s14 = scalar_lea.vmem %s1110_s30, 512  ;;  %p1112_p9 = scmp.lt.s32.totalorder %s1444_s11, %s1110_s30 }
  0x7a   : > { %p1107_p3 = pnand %p1105_p10, %p1061_p1  ;;  %p1113_p5 = scmp.lt.s32.totalorder %s1111_s14, %s1104_s9 }
  0x7c   : > { %p1108_p4 = pneg %p1107_p3  ;;  %p1114_p7 = por %p1113_p5, %p1112_p9 }
  0x7e   : > { %p1115_p11 = pnand %p1114_p7, %p1108_p4 }
  0x80   : > { %1118 = shalt.err (!%p1115_p11)
}
  0x81   : > { %s1617_s2 = smov 4   ;;  %s1618_s7 = smov 64  }
  0x82   : > { %915 = dma.hbm_to_vmem [thread:$0]  (!%p1408_p12), %s1450_s13, 256, %s1444_s11, %s1452_s0, %s1618_s7, %s1618_s7, %s1617_s2  }
  0x83   : > { %271 = sbr.rel (%p1304_p8) target bundleno = 1042 (0x412), region = 36  ;;  %s1484_s6 = sand.u32 (!%p1304_p8), 1, %s1197_s16  }
  0x84   : > { %s819_s27 = sshll.u32 (!%p1304_p8), %s1484_s6, 2  ;;  %s274_s12 = scalar_lea.sflag (!%p1304_p8), [#allocation3], %s1484_s6 }
  0x85   : > { %s277_s29 = scalar_lea.vmem (!%p1304_p8), [#allocation2], %s819_s27  ;;  %p1619_p1 = scmp.ne.s32.totalorder (!%p1304_p8), %s1608_s23, 0 }
  0x8a   : > { %1172 = dma.done.wait (%p1619_p1), %s274_s12, 64  }
  0x8b   : > { %1174 = vsyncadd (%p1619_p1), %s274_s12, 4294967232  ;;  %s282_s0 = sand.u32 1, %s1285_s21   ;;  %s820_s25 = sshll.u32 %s1484_s6, 4 }
  0x8c   : > { %s283_s22 = scalar_lea.sflag [#allocation6], %s282_s0  ;;  %s1496_s11 = scalar_lea.vmem [#allocation5], %s820_s25 }
  0x8d   : > { %1176 = dma.done.wait (%p1619_p1), %s283_s22, 256  }
  0x8e   : > { %1178 = vsyncadd (%p1619_p1), %s283_s22, 4294967040  ;;  %p1620_p8 = scmp.eq.s32.totalorder %s1285_s21, 0 }
  0x90   : > { %1180 = dma.done.wait (%p1620_p8), [#allocation6], 256   ;;  %p1621_p12 = pmov %p1620_p8 }
  0x91   : > { %p1622_p13 = pmov %p1620_p8 }
  0x92   : > { %1182 = vsyncadd (%p1621_p12), [#allocation6], 4294967040 }
  0x93   : > { %1184 = dma.done.wait (%p1622_p13), [#allocation9], 16   ;;  %p1623_p0 = pmov %p1620_p8 }
  0x94   : > { %v1221_v0 = vmov 0.0   ;;  %vm1222_vm0 = vmmov 0   ;;  %v985_v1 = vld [vmem:[#allocation7] sm:$0xff]   ;;  %v986_v2 = vld [vmem:[#allocation7 + $0x8] sm:$0xff]   ;;  %v327_v3 = vld [vmem:[%s277_s29] sm:$0xf] }
  0x95   : > { %1186 = vsyncadd (%p1623_p0), [#allocation9], 4294967280  ;;  %856 = vmatprep.subr.bf16.mxu0 %v1221_v0  ;;  %860 = vmatprep.mubr.msk.bf16.mxu0 %vm1222_vm0, %v1221_v0  ;;  %vm351_vm1 = vcmask 261120   ;;  %v397_v4 = vld [vmem:[%s1496_s11] sm:$0xf]  ;;  %vm398_vm2 = vcmask 64512  }
  0x96   : > { %864 = vmatprep.subr.bf16.mxu1 %v1221_v0  ;;  %866 = vmatprep.mubr.msk.bf16.mxu1 %vm1222_vm0, %v1221_v0  ;;  %v403_v5 = vsel %vm398_vm2, %v397_v4, 0  ;;  %v829_v6 = vld [vmem:[%s1496_s11 + $0x4] sm:$0xf]  ;;  %v824_v8 = vld [vmem:[#allocation8] ss:$0 sm:$0xff]  ;;  %s1223_s21 = smov 104  }
  0x97   : > { %857 = vmatpush3.bf16.msra.mxu0 %v985_v1  ;;  %865 = vmatpush3.bf16.xpose.msra.mxu1 %v403_v5  ;;  %v468_v7 = vsel %vm398_vm2, %v829_v6, 0  ;;  %v832_v15 = vld [vmem:[%s1496_s11 + $0x8] sm:$0xf]  ;;  %s1224_s23 = smov 120   ;;  %s1225_s13 = smov 112   ;;  %vm457_vm3 = vcmask 60416  }
  0x98   : > { %858 = vmatprep.subr.bf16.mxu0 %v1221_v0  ;;  %876 = vmatprep.subr.bf16.mxu1 %v1221_v0  ;;  %v532_v17 = vsel %vm398_vm2, %v832_v15, 0  ;;  %v835_v18 = vld [vmem:[%s1496_s11 + $0xc] sm:$0xf]  ;;  %s323_s5 = scalar_lea.vmem [#allocation10], %s820_s25  ;;  %s844_s9 = sshll.u32 %s1205_s18, 8 }
  0x99   : > { %v596_v19 = vsel %vm398_vm2, %v835_v18, 0  ;;  %s669_s10 = sshll.u32 %s323_s5, 4  ;;  %s1544_s2 = scalar_lea.hbm %s1600_s4, %s844_s9  ;;  %s1546_s10 = int_to_ptr.vmem [resolvable:$true] %s669_s10 }
  0x9a   : > { %s653_s7 = scalar_lea.sflag [#allocation4], %s1484_s6  ;;  %s1119_s18 = scalar_lea.vmem %s1546_s10, 256 }
  0x9b   : > { %859 = vmatpush3.bf16.msra.mxu0 %v986_v2  ;;  %p1120_p2 = scmp.ne.s32.totalorder %s1546_s10, %s1119_s18  ;;  %p1624_p6 = scmp.ne.s32.totalorder %s1614_s28, 0 }
  0x9c   : > { %870 = vmatprep.subr.bf16.mxu0 %v1221_v0  ;;  %s1226_s27 = smov [#allocation10]  }
  0x9d   : > { %p1121_p10 = pnand %p1120_p2, %p1624_p6  ;;  %s1123_s12 = sshll.u32 %s1226_s27, 4  ;;  %s1124_s12 = int_to_ptr.vmem [resolvable:$false] %s1123_s12 }
  0x9e   : > { %861 = vmatmul.mubr.msk.bf16.vlgmr.msra.gmra.mrb[0].mxu0 %vm351_vm1, %v327_v3  ;;  %s1125_s29 = scalar_lea.vmem %s1124_s12, 512  ;;  %p1126_p4 = scmp.lt.s32.totalorder %s1546_s10, %s1124_s12 }
  0x9f   : > { %872 = vmatprep.mubr.msk.bf16.mxu0 %vm1222_vm0, %v1221_v0  ;;  %p1122_p3 = pneg %p1121_p10  ;;  %p1127_p9 = scmp.lt.s32.totalorder %s1125_s29, %s1119_s18 }
  0xa1   : > { %p1128_p5 = por %p1127_p9, %p1126_p4 }
  0xa3   : > { %p1129_p7 = pnand %p1128_p5, %p1122_p3 }
  0xa4   : > { %871 = vmatpush3.bf16.xpose.msra.mxu0 %v468_v7 }
  0xa5   : > { %882 = vmatprep.subr.bf16.mxu0 %v1221_v0 }
 0x171   : > { %v389_v9 = vpop.f32.mrb[0].mxu0 }
 0x172   : > { %v390_v10 = vadd.f32 %v824_v8, %v389_v9  ;;  %v862_v11 = vpop.f32.mrb[1].mxu0 }
 0x173   : > { %v392_v12 = vpop.f32.mrb[2].mxu0 }
 0x174   : > { %v395_v13 = vmul.f32 0.35355338, %v390_v10  ;;  %v863_v14 = vpop.f32.mrb[3].mxu0 }
 0x176   : > { %v396_v16 = vpack.c.bf16 %v395_v13, %v395_v13 }
 0x178   : > { %590 = vrot.lane.b32.xlu1 %v396_v16, %s1223_s21  ;;  %462 = vrot.lane.b32.xlu0 %v396_v16, %s1224_s23 }
 0x179   : > { %867 = vmatmul.mubr.msk.bf16.vlgmr.msra.gmra.mrb[0].mxu1 %vm398_vm2, %v396_v16 }
 0x17a   : > { %877 = vmatpush3.bf16.xpose.msra.mxu1 %v532_v17  ;;  %878 = vmatprep.mubr.msk.bf16.mxu1 %vm1222_vm0, %v1221_v0 }
 0x17c   : > { %526 = vrot.lane.b32.xlu0 %v396_v16, %s1225_s13 }
 0x1ea   : > { %v463_v20 = vpop.permute.xlu0 %462  ;;  %v591_v22 = vpop.permute.xlu1 %590 }
 0x1eb   : > { %873 = vmatmul.mubr.msk.bf16.vlgmr.msra.gmra.mrb[4].mxu0 %vm398_vm2, %v463_v20 }
 0x1ec   : > { %883 = vmatpush3.bf16.xpose.msra.mxu0 %v596_v19  ;;  %884 = vmatprep.mubr.msk.bf16.mxu0 %vm1222_vm0, %v1221_v0 }
 0x1ee   : > { %v527_v21 = vpop.permute.xlu0 %526 }
 0x1ef   : > { %879 = vmatmul.mubr.msk.bf16.vlgmr.msra.gmra.mrb[4].mxu1 %vm398_vm2, %v527_v21 }
 0x1f3   : > { %885 = vmatmul.mubr.msk.bf16.vlgmr.msra.gmra.mrb[8].mxu0 %vm398_vm2, %v591_v22 }
 0x24c   : > { %v439_v23 = vpop.f32.mrb[0].mxu1 }
 0x24d   : > { %v868_v24 = vpop.f32.mrb[1].mxu1  ;;  %v445_v25 = vsel %vm398_vm2, %v439_v23, -inf }
 0x24e   : > { %446 = vmax.xlane.f32.xlu1 %v445_v25  ;;  %v442_v26 = vpop.f32.mrb[2].mxu1 }
 0x24f   : > { %v869_v27 = vpop.f32.mrb[3].mxu1 }
 0x2be   : > { %v504_v28 = vpop.f32.mrb[4].mxu0 }
 0x2bf   : > { %v874_v29 = vpop.f32.mrb[5].mxu0  ;;  %v510_v30 = vsel %vm398_vm2, %v504_v28, -inf }
 0x2c0   : > { %511 = vmax.xlane.f32.xlu0 %v510_v30  ;;  %v507_v31 = vpop.f32.mrb[6].mxu0 }
 0x2c1   : > { %v875_v32 = vpop.f32.mrb[7].mxu0 }
 0x2c2   : > { %v568_v33 = vpop.f32.mrb[4].mxu1 }
 0x2c3   : > { %v880_v34 = vpop.f32.mrb[5].mxu1  ;;  %v574_v35 = vsel %vm398_vm2, %v568_v33, -inf }
 0x2c4   : > { %v571_v36 = vpop.f32.mrb[6].mxu1  ;;  %575 = vmax.xlane.f32.xlu0 %v574_v35 }
 0x2c5   : > { %v881_v37 = vpop.f32.mrb[7].mxu1 }
 0x2c6   : > { %v632_v38 = vpop.f32.mrb[8].mxu0 }
 0x2c7   : > { %v886_v39 = vpop.f32.mrb[9].mxu0  ;;  %v638_v40 = vsel %vm398_vm2, %v632_v38, -inf }
 0x2c8   : > { %639 = vmax.xlane.f32.xlu1 %v638_v40  ;;  %v635_v41 = vpop.f32.mrb[10].mxu0 }
 0x2c9   : > { %v887_v42 = vpop.f32.mrb[11].mxu0 }
 0x2db   : > { %v447_v43 = vpop.xlane.xlu1 %446 }
 0x2dc   : > { %v448_v44 = vsub.f32 %v439_v23, %v447_v43 }
 0x2de   : > { %v449_v45 = vmul.f32 1.442695, %v448_v44 }
 0x2e0   : > { %987 = vpow2.f32 %v449_v45 }
 0x2ea   : > { %v988_v46 = vpop.eup %987 }
 0x2eb   : > { %v451_v47 = vsel %vm398_vm2, %v988_v46, 0.0 }
 0x2ec   : > { %452 = vadd.xlane.f32.xlu0 %v451_v47 }
 0x34d   : > { %v512_v48 = vpop.xlane.xlu0 %511 }
 0x34e   : > { %v513_v49 = vsub.f32 %v504_v28, %v512_v48 }
 0x350   : > { %v514_v50 = vmul.f32 1.442695, %v513_v49 }
 0x351   : > { %v576_v51 = vpop.xlane.xlu0 %575 }
 0x352   : > { %989 = vpow2.f32 %v514_v50  ;;  %v577_v52 = vsub.f32 %v568_v33, %v576_v51 }
 0x354   : > { %v578_v53 = vmul.f32 1.442695, %v577_v52 }
 0x355   : > { %v640_v54 = vpop.xlane.xlu1 %639 }
 0x356   : > { %991 = vpow2.f32 %v578_v53  ;;  %v641_v55 = vsub.f32 %v632_v38, %v640_v54 }
 0x358   : > { %v642_v56 = vmul.f32 1.442695, %v641_v55 }
 0x35a   : > { %993 = vpow2.f32 %v642_v56 }
 0x35c   : > { %v990_v57 = vpop.eup %989 }
 0x35d   : > { %v516_v58 = vsel %vm398_vm2, %v990_v57, 0.0 }
 0x35e   : > { %517 = vadd.xlane.f32.xlu1 %v516_v58 }
 0x360   : > { %v992_v59 = vpop.eup %991 }
 0x361   : > { %v580_v60 = vsel %vm398_vm2, %v992_v59, 0.0 }
 0x362   : > { %581 = vadd.xlane.f32.xlu0 %v580_v60 }
 0x364   : > { %v994_v61 = vpop.eup %993 }
 0x365   : > { %v644_v62 = vsel %vm398_vm2, %v994_v61, 0.0 }
 0x366   : > { %645 = vadd.xlane.f32.xlu1 %v644_v62 }
 0x379   : > { %v453_v63 = vpop.xlane.xlu0 %452 }
 0x37a   : > { %995 = vrcp.f32 %v453_v63 }
 0x384   : > { %v996_v0 = vpop.eup %995 }
 0x385   : > { %v455_v1 = vmul.f32 %v996_v0, %v988_v46 }
 0x387   : > { %v456_v2 = vpack.c.bf16 %v455_v1, %v455_v1 }
 0x389   : > { %458 = vst.msk [vmem:[%s323_s5] sm:$0xf] %vm457_vm3, %v456_v2 }
 0x3eb   : > { %v518_v3 = vpop.xlane.xlu1 %517 }
 0x3ec   : > { %997 = vrcp.f32 %v518_v3 }
 0x3ef   : > { %v582_v4 = vpop.xlane.xlu0 %581 }
 0x3f0   : > { %999 = vrcp.f32 %v582_v4 }
 0x3f3   : > { %v646_v5 = vpop.xlane.xlu1 %645 }
 0x3f4   : > { %1001 = vrcp.f32 %v646_v5 }
 0x3f6   : > { %v998_v6 = vpop.eup %997 }
 0x3f7   : > { %v520_v7 = vmul.f32 %v998_v6, %v990_v57 }
 0x3f9   : > { %v521_v8 = vpack.c.bf16 %v520_v7, %v520_v7 }
 0x3fa   : > { %v1000_v9 = vpop.eup %999 }
 0x3fb   : > { %831 = vst.msk [vmem:[%s323_s5 + $0x4] sm:$0xf] %vm457_vm3, %v521_v8  ;;  %v584_v10 = vmul.f32 %v1000_v9, %v992_v59 }
 0x3fd   : > { %v585_v11 = vpack.c.bf16 %v584_v10, %v584_v10 }
 0x3fe   : > { %v1002_v12 = vpop.eup %1001 }
 0x3ff   : > { %834 = vst.msk [vmem:[%s323_s5 + $0x8] sm:$0xf] %vm457_vm3, %v585_v11  ;;  %v648_v13 = vmul.f32 %v1002_v12, %v994_v61 }
 0x401   : > { %v649_v14 = vpack.c.bf16 %v648_v13, %v648_v13 }
 0x403   : > { %837 = vst.msk [vmem:[%s323_s5 + $0xc] sm:$0xf] %vm457_vm3, %v649_v14 }
 0x404   : > { %1132 = shalt.err (!%p1129_p7)
}
 0x405   : > { %s1133_s0 = scalar_lea.hbm %s1544_s2, 256  ;;  %s1137_s11 = scalar_lea.hbm %s1600_s4, 512 }
 0x406   : > { %p1134_p11 = scmp.ne.s32.totalorder %s1544_s2, %s1133_s0  ;;  %p1138_p12 = scmp.lt.u32.totalorder %s1544_s2, %s1600_s4 }
 0x407   : > { %p1139_p13 = scmp.lt.u32.totalorder %s1137_s11, %s1133_s0  ;;  %p1141_p2 = scmp.lt.u32.totalorder %s1133_s0, %s1544_s2 }
 0x408   : > { %p1135_p1 = pnand %p1134_p11, %p1624_p6 }
 0x409   : > { %p1140_p0 = por %p1139_p13, %p1138_p12 }
 0x40a   : > { %p1136_p8 = pneg %p1135_p1 }
 0x40b   : > { %p1142_p10 = por %p1141_p2, %p1140_p0 }
 0x40d   : > { %p1143_p3 = pnand %p1142_p10, %p1136_p8 }
 0x40f   : > { %1146 = shalt.err (!%p1143_p3)
}
 0x410   : > { %s1227_s13 = smov 64   ;;  %s1228_s5 = smov 4  }
 0x411   : > { %900 = dma.vmem_to_hbm [thread:$0]  (%p1624_p6), %s1546_s10, 256, %s1544_s2, %s653_s7, %s1227_s13, %s1227_s13, %s1228_s5  }
 0x412 PF: > { %s684_s9 = sand.u32 1, %s1193_s15   ;;  %p1625_p4 = scmp.ne.s32.totalorder %s1609_s24, 0 }
 0x413   : > { %p1626_p9 = scmp.ge.s32.totalorder %s1213_s20, 2  ;;  %s685_s30 = scalar_lea.sflag [#allocation4], %s684_s9 }
 0x415   : > { %p917_p5 = pnand %p1626_p9, %p1625_p4 }
 0x417   : > { %1188 = dma.done.wait (!%p917_p5), %s685_s30, 256  }
 0x418   : > { %1190 = vsyncadd (!%p917_p5), %s685_s30, 4294967040  ;;  %s24_s20 = sadd.s32 1, %s1213_s20   ;;  %s1627_s15 = smov %s1197_s16 }
 0x419   : > { %p21_p7 = scmp.ge.s32.totalorder %s24_s20, 4   ;;  %s1628_s16 = smov %s1201_s17 }
 0x41a   : > { %s1629_s17 = smov %s1399_s8  ;;  %s1630_s18 = smov %s1209_s19 }
 0x41b   : > { %s1631_s19 = smov %s1633_s26  ;;  %23 = sbr.rel (!%p21_p7) target bundleno = 12 (0xc), region = 110 }
 0x422   :  { %690 = vsyncpa [#allocation3], 1 }
 0x423   :  { %692 = vsyncpa [#allocation3 + $0x1], 1 }
 0x424   :  { %693 = vsyncpa [#allocation6], 1 }
 0x425   :  { %695 = vsyncpa [#allocation6 + $0x1], 1 }
 0x426   :  { %696 = vsyncpa [#allocation9], 1 }
 0x427   :  { %697 = vsyncpa [#allocation4], 1 }
 0x428   :  { %699 = vsyncpa [#allocation4 + $0x1], 1 }

</bundles_post_ra>
